<compile_context>
chip_gen: v7x
topology: tpu7x:2x2x1
jax: 0.10.0
libtpu: 0.0.40
codegen_flags: <defaults>
</compile_context>

<pallas_src>
import jax
import jax.numpy as jnp
import numpy as np
from jax.experimental import pallas as pl
from jax.experimental.pallas import tpu as pltpu


def _round_up(x, m):
    return ((x + m - 1) // m) * m


def _stable_softplus(x):
    # Matches torch.log(1 + exp(x)) / F.softplus (threshold=20) without
    # exp overflow for large x.
    return jnp.where(x > 20.0, x, jnp.log1p(jnp.exp(jnp.minimum(x, 20.0))))


def _pick_tile(dim, granule, target):
    """Pick (tile, padded_dim): tile is a multiple of `granule`, padded_dim is a
    multiple of tile, and padding is minimized (round to HW granule, not tile)."""
    target = max(target, granule)
    padded = _round_up(dim, granule)
    if padded <= target:
        return padded, padded                      # single full-extent block
    # Prefer an exact tiling of the granule-padded size.
    t = (target // granule) * granule
    while t >= granule:
        if padded % t == 0:
            return t, padded
        t -= granule
    # Fallback: minimal number of blocks at ~target size (adds < granule/block).
    nb = -(-padded // target)
    t = _round_up(-(-padded // nb), granule)
    return t, nb * t


def _default_vmem_limit():
    # Generation-aware: ~96 MiB on 128-MiB VMEM parts (v5e/v6e), ~48 MiB on
    # v7x (64 MiB physical), with a conservative fallback.
    try:
        info = pltpu.get_tpu_info()
        cap = getattr(info, "vmem_capacity_bytes", None)
        if cap:
            return int(min(100 * 1024 * 1024, (cap * 3) // 4))
    except Exception:
        pass
    return 48 * 1024 * 1024


# ----------------------------------------------------------------------------
# Fused (M, N, K)-tiled kernel.  Outputs are f32 and K-resident (index map
# ignores k), so they double as accumulators; bias is folded into k==0 init.
# ----------------------------------------------------------------------------
def _npn_matmul_kernel(xm_ref, xs_ref, wm_ref, ws_ref, bm_ref, bs_ref,
                       om_ref, os_ref):
    k = pl.program_id(2)

    @pl.when(k == 0)
    def _():
        om_ref[...] = jnp.broadcast_to(bm_ref[...], om_ref.shape)
        os_ref[...] = jnp.broadcast_to(bs_ref[...], os_ref.shape)

    cdt = wm_ref.dtype            # MXU input dtype (bf16 default, f32 optional)
    xm = xm_ref[...]              # activations kept f32 in VMEM
    xs = xs_ref[...]
    wm = wm_ref[...]
    ws = ws_ref[...]

    # Element-wise work in f32 (v5e has no bf16 VPU); cast only at MXU boundary.
    wm_f = wm.astype(jnp.float32)
    wm_sq = (wm_f * wm_f).astype(cdt)        # W_m^2 computed in-kernel (VPU)
    var_act = (xs + xm * xm).astype(cdt)     # (x_s + x_m^2) for variance path

    # mean path
    om_ref[...] += jnp.dot(xm.astype(cdt), wm,
                           preferred_element_type=jnp.float32)
    # variance path: (x_s + x_m^2) @ W_s + x_s @ W_m^2
    os_ref[...] += (
        jnp.dot(var_act, ws, preferred_element_type=jnp.float32)
        + jnp.dot(xs.astype(cdt), wm_sq, preferred_element_type=jnp.float32))


# ----------------------------------------------------------------------------
# Wrapper
# ----------------------------------------------------------------------------
def gaussian_npn_linear(input_m, input_s, W_m, M_s, b_m, p_s, *,
                        tm=512, tn=512, tk=1024,
                        use_bf16=True, vmem_limit_bytes=None):
    """Pallas TPU implementation of GaussianNPNLinearLayer.forward.

    input_m, input_s: (B, F_in) float32
    W_m, M_s:         (F_in, F_out) float32
    b_m, p_s:         (F_out,) float32
    returns (o_m, o_s), each (B, F_out) float32
    """
    B, F_in = input_m.shape
    F_in_w, F_out = W_m.shape
    assert F_in_w == F_in

    compute_dtype = jnp.bfloat16 if use_bf16 else jnp.float32
    if vmem_limit_bytes is None:
        vmem_limit_bytes = _default_vmem_limit()

    f32 = jnp.float32
    # Hardware-granularity padding + tiles that divide the padded dims.
    tm_e, B_p = _pick_tile(B, 8, tm)          # f32 sublane granule on batch
    tn_e, N_p = _pick_tile(F_out, 128, tn)    # lane granule on output features
    tk_e, K_p = _pick_tile(F_in, 128, tk)     # lane/MXU granule on reduction

    # Zero padding keeps the matmuls exact (softplus applied BEFORE padding, so
    # padded W_s entries are 0); padded rows/cols are sliced off at the end.
    xm = jnp.pad(input_m.astype(f32), ((0, B_p - B), (0, K_p - F_in)))
    xs = jnp.pad(input_s.astype(f32), ((0, B_p - B), (0, K_p - F_in)))
    wm = jnp.pad(W_m.astype(f32),
                 ((0, K_p - F_in), (0, N_p - F_out))).astype(compute_dtype)
    ws = jnp.pad(_stable_softplus(M_s.astype(f32)),
                 ((0, K_p - F_in), (0, N_p - F_out))).astype(compute_dtype)
    bm = jnp.pad(b_m.astype(f32), (0, N_p - F_out)).reshape(1, N_p)
    bs = jnp.pad(_stable_softplus(p_s.astype(f32)),
                 (0, N_p - F_out)).reshape(1, N_p)

    grid = (B_p // tm_e, N_p // tn_e, K_p // tk_e)

    x_spec = pl.BlockSpec((tm_e, tk_e), lambda i, j, k: (i, k))
    w_spec = pl.BlockSpec((tk_e, tn_e), lambda i, j, k: (k, j))
    b_spec = pl.BlockSpec((1, tn_e), lambda i, j, k: (0, j))
    o_spec = pl.BlockSpec((tm_e, tn_e), lambda i, j, k: (i, j))

    om, osd = pl.pallas_call(
        _npn_matmul_kernel,
        out_shape=(jax.ShapeDtypeStruct((B_p, N_p), f32),
                   jax.ShapeDtypeStruct((B_p, N_p), f32)),
        grid_spec=pltpu.PrefetchScalarGridSpec(
            num_scalar_prefetch=0,
            grid=grid,
            in_specs=[x_spec, x_spec,       # x_m, x_s   (f32 activations)
                      w_spec, w_spec,       # W_m, W_s   (bf16 by default)
                      b_spec, b_spec],      # b_m, b_s
            out_specs=[o_spec, o_spec],
        ),
        compiler_params=pltpu.CompilerParams(
            dimension_semantics=("parallel", "parallel", "arbitrary"),
            vmem_limit_bytes=vmem_limit_bytes),
    )(xm, xs, wm, ws, bm, bs)

    return om[:B, :F_out], osd[:B, :F_out]


# ----------------------------------------------------------------------------
# Parameter init (mirrors GaussianNPNLinearLayer.__init__) and f64 reference.
# ----------------------------------------------------------------------------
def init_params(in_features, out_features, key):
    k1, k2 = jax.random.split(key)
    scale = np.sqrt(6.0) / np.sqrt(in_features + out_features)
    W_m = 2.0 * scale * (jax.random.uniform(k1, (in_features, out_features)) - 0.5)
    W_s = 1.0 * scale * jax.random.uniform(k2, (in_features, out_features),
                                           minval=1e-6, maxval=1.0)
    M_s = jnp.log(jnp.exp(W_s) - 1.0)
    b_m = jnp.zeros((out_features,), jnp.float32)
    p_s = jnp.exp(-1.0 * jnp.ones((out_features,), jnp.float32))
    return (W_m.astype(jnp.float32), M_s.astype(jnp.float32), b_m, p_s)


def reference_forward_np(input_m, input_s, W_m, M_s, b_m, p_s):
    """float64 numpy reference mirroring the PyTorch code line-by-line."""
    xm = np.asarray(input_m, np.float64)
    xs = np.asarray(input_s, np.float64)
    W_m = np.asarray(W_m, np.float64)
    M_s = np.asarray(M_s, np.float64)
    b_m = np.asarray(b_m, np.float64)
    p_s = np.asarray(p_s, np.float64)
    b_s = np.log1p(np.exp(p_s))
    W_s = np.log1p(np.exp(M_s))
    o_m = b_m + xm @ W_m
    o_s = b_s + xs @ W_s + xs @ (W_m ** 2) + (xm ** 2) @ W_s
    return o_m, o_s


if __name__ == "__main__":
    key = jax.random.PRNGKey(0)
    k_param, k_xm, k_xs = jax.random.split(key, 3)

    # Small demo shapes, deliberately non-multiples of 128 so the HW-granule
    # padding path is exercised.
    B, F_in, F_out = 72, 288, 160

    W_m, M_s, b_m, p_s = init_params(F_in, F_out, k_param)
    input_m = jax.random.normal(k_xm, (B, F_in), jnp.float32)
    input_s = jax.random.uniform(k_xs, (B, F_in), jnp.float32)  # variance-like

    ref_m, ref_s = reference_forward_np(input_m, input_s, W_m, M_s, b_m, p_s)

    # 1) Default bf16-MXU path, with small tiles so the grid has multiple
    #    blocks on every axis (exercises K-resident accumulation + padding).
    o_m, o_s = gaussian_npn_linear(input_m, input_s, W_m, M_s, b_m, p_s,
                                   tm=32, tn=128, tk=128, use_bf16=True)
    jax.block_until_ready((o_m, o_s))
    np.testing.assert_allclose(np.asarray(o_m, np.float64), ref_m,
                               rtol=2e-2, atol=5e-2)
    np.testing.assert_allclose(np.asarray(o_s, np.float64), ref_s,
                               rtol=2e-2, atol=5e-2)

    # 2) f32-MXU path with default (large) tiles — tight tolerance check.
    o_m32, o_s32 = gaussian_npn_linear(input_m, input_s, W_m, M_s, b_m, p_s,
                                       use_bf16=False)
    jax.block_until_ready((o_m32, o_s32))
    np.testing.assert_allclose(np.asarray(o_m32, np.float64), ref_m,
                               rtol=1e-3, atol=1e-3)
    np.testing.assert_allclose(np.asarray(o_s32, np.float64), ref_s,
                               rtol=1e-3, atol=1e-3)

    print("KERNEL_OK")
</pallas_src>

<mosaic_0001>
module attributes {stable_mosaic.version = 11 : i64} {
  func.func @_npn_matmul_kernel(%arg0: i32, %arg1: i32, %arg2: i32, %arg3: memref<24x128xf32, #tpu.memory_space<vmem>>, %arg4: memref<24x128xf32, #tpu.memory_space<vmem>>, %arg5: memref<128x128xbf16, #tpu.memory_space<vmem>>, %arg6: memref<128x128xbf16, #tpu.memory_space<vmem>>, %arg7: memref<1x128xf32, #tpu.memory_space<vmem>>, %arg8: memref<1x128xf32, #tpu.memory_space<vmem>>, %arg9: memref<24x128xf32, #tpu.memory_space<vmem>>, %arg10: memref<24x128xf32, #tpu.memory_space<vmem>>) attributes {dimension_semantics = [#tpu.dimension_semantics<parallel>, #tpu.dimension_semantics<parallel>, #tpu.dimension_semantics<arbitrary>], iteration_bounds = array<i64: 3, 2, 3>, scalar_prefetch = 0 : i64, scratch_operands = 0 : i64, tpu.core_type = #tpu.core_type<tc>, window_params = [{transform_indices = @transform_0, window_bounds = array<i64: 24, 128>}, {transform_indices = @transform_1, window_bounds = array<i64: 24, 128>}, {transform_indices = @transform_2, window_bounds = array<i64: 128, 128>}, {transform_indices = @transform_3, window_bounds = array<i64: 128, 128>}, {transform_indices = @transform_4, window_bounds = array<i64: 1, 128>}, {transform_indices = @transform_5, window_bounds = array<i64: 1, 128>}, {transform_indices = @transform_6, window_bounds = array<i64: 24, 128>}, {transform_indices = @transform_7, window_bounds = array<i64: 24, 128>}]} {
    %c0_i32 = arith.constant 0 : i32
    %0 = arith.cmpi eq, %arg2, %c0_i32 : i32
    %1 = arith.extui %0 : i1 to i32
    %c0_i32_0 = arith.constant 0 : i32
    %2 = arith.cmpi ne, %1, %c0_i32_0 : i32
    scf.if %2 {
      %c0_18 = arith.constant 0 : index
      %c0_19 = arith.constant 0 : index
      %25 = vector.load %arg7[%c0_18, %c0_19] : memref<1x128xf32, #tpu.memory_space<vmem>>, vector<1x128xf32>
      %26 = vector.shape_cast %25 : vector<1x128xf32> to vector<1x128xf32>
      %27 = vector.broadcast %26 : vector<1x128xf32> to vector<24x128xf32>
      %c0_20 = arith.constant 0 : index
      %c0_21 = arith.constant 0 : index
      %28 = vector.load %arg9[%c0_20, %c0_21] : memref<24x128xf32, #tpu.memory_space<vmem>>, vector<24x128xf32>
      tpu.vector_store %arg9[%c0_20, %c0_21], %27 {strides = array<i32>} : memref<24x128xf32, #tpu.memory_space<vmem>>, vector<24x128xf32>,
      %c0_22 = arith.constant 0 : index
      %c0_23 = arith.constant 0 : index
      %29 = vector.load %arg8[%c0_22, %c0_23] : memref<1x128xf32, #tpu.memory_space<vmem>>, vector<1x128xf32>
      %30 = vector.shape_cast %29 : vector<1x128xf32> to vector<1x128xf32>
      %31 = vector.broadcast %30 : vector<1x128xf32> to vector<24x128xf32>
      %c0_24 = arith.constant 0 : index
      %c0_25 = arith.constant 0 : index
      %32 = vector.load %arg10[%c0_24, %c0_25] : memref<24x128xf32, #tpu.memory_space<vmem>>, vector<24x128xf32>
      tpu.vector_store %arg10[%c0_24, %c0_25], %31 {strides = array<i32>} : memref<24x128xf32, #tpu.memory_space<vmem>>, vector<24x128xf32>,
    } else {
    }
    %c0 = arith.constant 0 : index
    %c0_1 = arith.constant 0 : index
    %3 = vector.load %arg3[%c0, %c0_1] : memref<24x128xf32, #tpu.memory_space<vmem>>, vector<24x128xf32>
    %c0_2 = arith.constant 0 : index
    %c0_3 = arith.constant 0 : index
    %4 = vector.load %arg4[%c0_2, %c0_3] : memref<24x128xf32, #tpu.memory_space<vmem>>, vector<24x128xf32>
    %c0_4 = arith.constant 0 : index
    %c0_5 = arith.constant 0 : index
    %5 = vector.load %arg5[%c0_4, %c0_5] : memref<128x128xbf16, #tpu.memory_space<vmem>>, vector<128x128xbf16>
    %c0_6 = arith.constant 0 : index
    %c0_7 = arith.constant 0 : index
    %6 = vector.load %arg6[%c0_6, %c0_7] : memref<128x128xbf16, #tpu.memory_space<vmem>>, vector<128x128xbf16>
    %7 = arith.extf %5 : vector<128x128xbf16> to vector<128x128xf32>
    %8 = arith.mulf %7, %7 : vector<128x128xf32>
    %9 = arith.truncf %8 : vector<128x128xf32> to vector<128x128xbf16>
    %10 = arith.mulf %3, %3 : vector<24x128xf32>
    %11 = arith.addf %4, %10 : vector<24x128xf32>
    %12 = arith.truncf %11 : vector<24x128xf32> to vector<24x128xbf16>
    %c0_8 = arith.constant 0 : index
    %c0_9 = arith.constant 0 : index
    %13 = vector.load %arg9[%c0_8, %c0_9] : memref<24x128xf32, #tpu.memory_space<vmem>>, vector<24x128xf32>
    %14 = arith.truncf %3 : vector<24x128xf32> to vector<24x128xbf16>
    %cst = arith.constant dense<0.000000e+00> : vector<24x128xf32>
    %15 = tpu.matmul %14, %5, %cst {dimension_numbers = #tpu.dot_dimension_numbers<[1], [0], [0], [1], [0, 0, 1, 1], [], []>} : vector<24x128xbf16>, vector<128x128xbf16>, vector<24x128xf32> -> vector<24x128xf32>
    %16 = arith.addf %13, %15 : vector<24x128xf32>
    %c0_10 = arith.constant 0 : index
    %c0_11 = arith.constant 0 : index
    %17 = vector.load %arg9[%c0_10, %c0_11] : memref<24x128xf32, #tpu.memory_space<vmem>>, vector<24x128xf32>
    tpu.vector_store %arg9[%c0_10, %c0_11], %16 {strides = array<i32>} : memref<24x128xf32, #tpu.memory_space<vmem>>, vector<24x128xf32>,
    %c0_12 = arith.constant 0 : index
    %c0_13 = arith.constant 0 : index
    %18 = vector.load %arg10[%c0_12, %c0_13] : memref<24x128xf32, #tpu.memory_space<vmem>>, vector<24x128xf32>
    %cst_14 = arith.constant dense<0.000000e+00> : vector<24x128xf32>
    %19 = tpu.matmul %12, %6, %cst_14 {dimension_numbers = #tpu.dot_dimension_numbers<[1], [0], [0], [1], [0, 0, 1, 1], [], []>} : vector<24x128xbf16>, vector<128x128xbf16>, vector<24x128xf32> -> vector<24x128xf32>
    %20 = arith.truncf %4 : vector<24x128xf32> to vector<24x128xbf16>
    %cst_15 = arith.constant dense<0.000000e+00> : vector<24x128xf32>
    %21 = tpu.matmul %20, %9, %cst_15 {dimension_numbers = #tpu.dot_dimension_numbers<[1], [0], [0], [1], [0, 0, 1, 1], [], []>} : vector<24x128xbf16>, vector<128x128xbf16>, vector<24x128xf32> -> vector<24x128xf32>
    %22 = arith.addf %19, %21 : vector<24x128xf32>
    %23 = arith.addf %18, %22 : vector<24x128xf32>
    %c0_16 = arith.constant 0 : index
    %c0_17 = arith.constant 0 : index
    %24 = vector.load %arg10[%c0_16, %c0_17] : memref<24x128xf32, #tpu.memory_space<vmem>>, vector<24x128xf32>
    tpu.vector_store %arg10[%c0_16, %c0_17], %23 {strides = array<i32>} : memref<24x128xf32, #tpu.memory_space<vmem>>, vector<24x128xf32>,
    return
  }
  func.func @transform_0(%arg0: i32, %arg1: i32, %arg2: i32) -> (i32, i32) {
    %c0_i32 = arith.constant 0 : i32
    return %arg0, %arg2 : i32, i32
  }
  func.func @transform_1(%arg0: i32, %arg1: i32, %arg2: i32) -> (i32, i32) {
    %c0_i32 = arith.constant 0 : i32
    return %arg0, %arg2 : i32, i32
  }
  func.func @transform_2(%arg0: i32, %arg1: i32, %arg2: i32) -> (i32, i32) {
    %c0_i32 = arith.constant 0 : i32
    return %arg2, %arg1 : i32, i32
  }
  func.func @transform_3(%arg0: i32, %arg1: i32, %arg2: i32) -> (i32, i32) {
    %c0_i32 = arith.constant 0 : i32
    return %arg2, %arg1 : i32, i32
  }
  func.func @transform_4(%arg0: i32, %arg1: i32, %arg2: i32) -> (i32, i32) {
    %c0_i32 = arith.constant 0 : i32
    %c0_i32_0 = arith.constant 0 : i32
    return %c0_i32, %arg1 : i32, i32
  }
  func.func @transform_5(%arg0: i32, %arg1: i32, %arg2: i32) -> (i32, i32) {
    %c0_i32 = arith.constant 0 : i32
    %c0_i32_0 = arith.constant 0 : i32
    return %c0_i32, %arg1 : i32, i32
  }
  func.func @transform_6(%arg0: i32, %arg1: i32, %arg2: i32) -> (i32, i32) {
    %c0_i32 = arith.constant 0 : i32
    return %arg0, %arg1 : i32, i32
  }
  func.func @transform_7(%arg0: i32, %arg1: i32, %arg2: i32) -> (i32, i32) {
    %c0_i32 = arith.constant 0 : i32
    return %arg0, %arg1 : i32, i32
  }
}

</mosaic_0001>

<bundles_post_ra>
// kernel: tpu_custom_call.1
= control target key start
LH: loop header
LB: loop body
LE: loop exit
PB: predicated region body
PF: predicated region fallthrough
CT: control target
= control target key end

     0   :  { %s2455_s0 = inlined_call_operand.hbm [shape: f32[72,384], index: 0, kind: input, shape index: {}]   ;;  %s2456_s1 = inlined_call_operand.hbm [shape: f32[72,384], index: 1, kind: input, shape index: {}]   ;;  %s2457_s2 = inlined_call_operand.hbm [shape: bf16[384,256], index: 2, kind: input, shape index: {}]   ;;  %s2458_s3 = inlined_call_operand.hbm [shape: bf16[384,256], index: 3, kind: input, shape index: {}]   ;;  %s2459_s4 = inlined_call_operand.vmem [shape: f32[1,256], index: 4, kind: input, shape index: {}]   ;;  %s2460_s5 = inlined_call_operand.vmem [shape: f32[1,256], index: 5, kind: input, shape index: {}]   ;;  %s2461_s6 = inlined_call_operand.hbm [shape: f32[72,256], index: 6, kind: output, shape index: {0}]   ;;  %s2462_s7 = inlined_call_operand.hbm [shape: f32[72,256], index: 7, kind: output, shape index: {1}]  }
   0x1   :  { %2491 = sst [smem:[#allocation33_spill]] %s2455_s0 }
   0x2   :  { %2492 = sst [smem:[#allocation34_spill]] %s2456_s1 }
   0x3   :  { %2493 = sst [smem:[#allocation35_spill]] %s2457_s2 }
   0x4   :  { %2494 = sst [smem:[#allocation36_spill]] %s2458_s3 }
   0x5   :  { %2495 = sst [smem:[#allocation37_spill]] %s2459_s4 }
   0x6   :  { %2496 = sst [smem:[#allocation38_spill]] %s2460_s5 }
   0x7   :  { %2497 = sst [smem:[#allocation39_spill]] %s2461_s6 }
   0x8   :  { %2498 = sst [smem:[#allocation40_spill]] %s2462_s7 }
   0x9   :  { %13 = vsyncpa [#allocation3], 0 }
   0xa   :  { %15 = vsyncpa [#allocation3 + $0x1], 0 }
   0xb   :  { %16 = vsyncpa [#allocation6], 0 }
   0xc   :  { %18 = vsyncpa [#allocation6 + $0x1], 0 }
   0xd   :  { %19 = vsyncpa [#allocation9], 0 }
   0xe   :  { %21 = vsyncpa [#allocation9 + $0x1], 0 }
   0xf   :  { %22 = vsyncpa [#allocation4], 0 }
  0x10   :  { %24 = vsyncpa [#allocation4 + $0x1], 0 }
  0x11   :  { %25 = vsyncpa [#allocation12], 0 }
  0x12   :  { %27 = vsyncpa [#allocation12 + $0x1], 0  ;;  %s1848_s24 = smov 0   ;;  %s1850_s25 = smov 0  }
  0x13   :  { %s1852_s26 = smov 0   ;;  %s1854_s27 = smov 0  }
  0x14   :  { %s1856_s28 = smov 0   ;;  %s1858_s29 = smov 0  }
  0x15   :  { %s1860_s30 = smov 0   ;;  %s1862_s8 = smov 0  }
  0x16   :  { %s1864_s9 = smov 0   ;;  %s1866_s10 = smov 0  }
  0x17   :  { %s1868_s11 = smov 0   ;;  %s1870_s12 = smov 0  }
  0x18   :  { %s1872_s13 = smov 0   ;;  %s1874_s14 = smov 0  }
  0x19   :  { %s1876_s15 = smov 0   ;;  %s1878_s16 = smov 0  }
  0x1a LB: > { %2499 = sst [smem:[#allocation19_spill]] %s1760_s8  ;;  %s1927_s17 = sadd.s32 4294967295, %s1792_s16   ;;  %s1792_s16 = sphi %s1878_s16, %s33_s16   ;;  %s1788_s15 = sphi %s1876_s15, %s2565_s15   ;;  %s1784_s14 = sphi %s1874_s14, %s2564_s14   ;;  %s1780_s13 = sphi %s1872_s13, %s2575_s13   ;;  %s1776_s12 = sphi %s1870_s12, %s2562_s12   ;;  %s1772_s11 = sphi %s1868_s11, %s2561_s11   ;;  %s1768_s10 = sphi %s1866_s10, %s2574_s10   ;;  %s1764_s9 = sphi %s1864_s9, %s2559_s9   ;;  %s1760_s8 = sphi %s1862_s8, %s2558_s8   ;;  %s1756_s30 = sphi %s1860_s30, %s2573_s30   ;;  %s1752_s29 = sphi %s1858_s29, %s2572_s29   ;;  %s1748_s28 = sphi %s1856_s28, %s2571_s28   ;;  %s1744_s27 = sphi %s1854_s27, %s2570_s27   ;;  %s1740_s26 = sphi %s1852_s26, %s2569_s26   ;;  %s1736_s25 = sphi %s1850_s25, %s2568_s25   ;;  %s1732_s24 = sphi %s1848_s24, %s2566_s24  }
  0x1b   : > { %2500 = sst [smem:[#allocation20_spill]] %s1764_s9  ;;  %s45_s18 = sadd.s32 1, %s1780_s13 }
  0x1c   : > { %2501 = sst [smem:[#allocation21_spill]] %s1768_s10  ;;  %p1930_p0 = scmp.ge.s32.totalorder %s45_s18, 3 }
  0x1d   : > { %2502 = sst [smem:[#allocation22_spill]] %s1772_s11  ;;  %p68_p1 = scmp.ne.s32.totalorder %s1764_s9, %s1760_s8 }
  0x1e   : > { %2503 = sst [smem:[#allocation23_spill]] %s1776_s12  ;;  %s2577_s18 = smov (%p1930_p0, %s45_s18), 0 }
  0x1f   : > { %2504 = sst [smem:[#allocation24_spill]] %s1780_s13  ;;  %p2474_p2 = scmp.eq.s32.totalorder %s1792_s16, 0 }
  0x20   : > { %2505 = sst [smem:[#allocation25_spill]] %s1784_s14  ;;  %p74_p3 = scmp.ne.s32.totalorder %s1760_s8, %s1756_s30 }
  0x21   : > { %2506 = sst [smem:[#allocation26_spill]] %s1788_s15  ;;  %s1946_s22 = ssub.s32 %s1780_s13, %s2577_s18 }
  0x22   : > { %2508 = sst [smem:[#allocation27_spill]] %s2577_s18  ;;  %p2473_p4 = scmp.eq.s32.totalorder %s1927_s17, 0 }
  0x23   : > { %p70_p5 = por %p2474_p2, %p68_p1  ;;  %p2472_p8 = scmp.lt.s32.totalorder %s1792_s16, 18 }
  0x24   : > { %p1954_p7 = por %p2473_p4, %p74_p3  ;;  %s2466_s21 = sand.u32 1, %s1764_s9  }
  0x25   : > { %s1962_s20 = smul.u32 24, %s2466_s21  ;;  %p1966_p9 = pnand %p2472_p8, %p70_p5 }
  0x26   : > { %s2509_s23 = scalar_select %p1954_p7, 1, 0 }
  0x27   : > { %s1303_s18 = smul.u32 9, %s1788_s15  ;;  %s313_s6 = sand.u32 1, %s1792_s16  }
  0x28   : > { %2510 = sst [smem:[#allocation28_spill]] %s2509_s23  ;;  %s2512_s1 = sld [smem:[#allocation34_spill]] }
  0x29   : > { %s1972_s7 = sadd.s32 %s1780_s13, %s1303_s18  ;;  %s317_s4 = scalar_lea.vmem [#allocation5], %s1962_s20 }
  0x2a   : > { %s2470_s12 = sshll.u32 %s1972_s7, 7  ;;  %s326_s11 = sshll.u32 %s317_s4, 4  ;;  %s1985_s11 = int_to_ptr.vmem [resolvable:$true] %s326_s11 }
  0x2b   : > { %s1988_s18 = scalar_lea.sflag [#allocation6], %s313_s6  ;;  %p1468_p13 = pneg %p1966_p9 }
  0x2e   : > { %s1981_s21 = scalar_lea.hbm %s2512_s1, %s2470_s12  ;;  %s1471_s12 = scalar_lea.hbm %s2512_s1, 3456 }
  0x2f   : > { %s1466_s23 = scalar_lea.hbm %s1981_s21, 384  ;;  %p1472_p5 = scmp.lt.u32.totalorder %s1981_s21, %s2512_s1 }
  0x30   : > { %p1467_p12 = scmp.ne.s32.totalorder %s1981_s21, %s1466_s23  ;;  %p1473_p8 = scmp.lt.u32.totalorder %s1471_s12, %s1466_s23 }
  0x31   : > { %p1475_p4 = scmp.lt.u32.totalorder %s1466_s23, %s1981_s21 }
  0x32   : > { %p1469_p1 = pnand %p1468_p13, %p1467_p12  ;;  %p1474_p6 = por %p1473_p8, %p1472_p5 }
  0x34   : > { %p1470_p3 = pneg %p1469_p1  ;;  %p1476_p2 = por %p1475_p4, %p1474_p6 }
  0x36   : > { %p1477_p10 = pnand %p1476_p2, %p1470_p3 }
  0x38   : > { %1480 = shalt.err (!%p1477_p10)
}
  0x39   : > { %s1481_s6 = scalar_lea.vmem %s1985_s11, 384  ;;  %s1794_s5 = smov [#allocation5]  }
  0x3a   : > { %p1482_p12 = scmp.ne.s32.totalorder %s1985_s11, %s1481_s6  ;;  %s1486_s10 = sshll.u32 %s1794_s5, 4  ;;  %s1487_s10 = int_to_ptr.vmem [resolvable:$false] %s1486_s10 }
  0x3b   : > { %s1488_s8 = scalar_lea.vmem %s1487_s10, 768  ;;  %p1489_p7 = scmp.lt.s32.totalorder %s1985_s11, %s1487_s10 }
  0x3c   : > { %p1484_p1 = pnand %p1482_p12, %p1468_p13  ;;  %p1490_p8 = scmp.lt.s32.totalorder %s1488_s8, %s1481_s6 }
  0x3e   : > { %p1485_p11 = pneg %p1484_p1  ;;  %p1491_p5 = por %p1490_p8, %p1489_p7 }
  0x40   : > { %p1492_p4 = pnand %p1491_p5, %p1485_p11 }
  0x42   : > { %1495 = shalt.err (!%p1492_p4)
}
  0x43   : > { %s2478_s12 = smov 384   ;;  %s2479_s23 = smov 128  }
  0x44   : > { %s1797_s4 = smov 8   ;;  %p2513_p2 = scmp.lt.s32.totalorder %s1792_s16, 19 }
  0x45   : > { %1288 = dma.hbm_to_vmem [thread:$0]  (!%p1966_p9), %s1981_s21, 384, %s1985_s11, %s1988_s18, %s2478_s12, %s2479_s23, %s1797_s4  }
  0x46   : > { %p2514_p6 = scmp.ge.s32.totalorder %s1792_s16, 1  ;;  %s2516_s5 = sshll.u32 %s1972_s7, 7 }
  0x47   : > { %s2517_s0 = sld [smem:[#allocation33_spill]]  ;;  %s294_s3 = scalar_lea.vmem [#allocation2], %s1962_s20 }
  0x48   : > { %p2023_p7 = pnand %p2514_p6, %p2513_p2  ;;  %s303_s2 = sshll.u32 %s294_s3, 4  ;;  %s2035_s2 = int_to_ptr.vmem [resolvable:$true] %s303_s2 }
  0x49   : > { %s2518_s11 = sand.u32 1, %s1764_s9  }
  0x4a   : > { %s2515_s6 = scalar_select %p2023_p7, 1, 0 }
  0x4b   : > { %s2039_s21 = scalar_lea.sflag [#allocation3], %s2518_s11 }
  0x4d   : > { %s2032_s1 = scalar_lea.hbm %s2517_s0, %s2516_s5  ;;  %s1501_s10 = scalar_lea.hbm %s2517_s0, 3456 }
  0x4e   : > { %s1496_s12 = scalar_lea.hbm %s2032_s1, 384  ;;  %p1502_p12 = scmp.lt.u32.totalorder %s2032_s1, %s2517_s0 }
  0x4f   : > { %p1497_p10 = scmp.ne.s32.totalorder %s2032_s1, %s1496_s12  ;;  %p1503_p1 = scmp.lt.u32.totalorder %s1501_s10, %s1496_s12 }
  0x50   : > { %p1505_p5 = scmp.lt.u32.totalorder %s1496_s12, %s2032_s1 }
  0x51   : > { %p1499_p11 = pnand %p1497_p10, %p1468_p13  ;;  %p1504_p8 = por %p1503_p1, %p1502_p12 }
  0x53   : > { %p1500_p3 = pneg %p1499_p11  ;;  %p1506_p4 = por %p1505_p5, %p1504_p8 }
  0x55   : > { %p1507_p2 = pnand %p1506_p4, %p1500_p3 }
  0x57   : > { %1510 = shalt.err (!%p1507_p2)
}
  0x58   : > { %s1511_s3 = scalar_lea.vmem %s2035_s2, 384  ;;  %s1798_s20 = smov [#allocation2]  }
  0x59   : > { %p1512_p6 = scmp.ne.s32.totalorder %s2035_s2, %s1511_s3  ;;  %s1516_s11 = sshll.u32 %s1798_s20, 4  ;;  %s1517_s11 = int_to_ptr.vmem [resolvable:$false] %s1516_s11 }
  0x5a   : > { %s1518_s23 = scalar_lea.vmem %s1517_s11, 768  ;;  %p1519_p7 = scmp.lt.s32.totalorder %s2035_s2, %s1517_s11 }
  0x5b   : > { %p1514_p10 = pnand %p1512_p6, %p1468_p13  ;;  %p1520_p12 = scmp.lt.s32.totalorder %s1518_s23, %s1511_s3 }
  0x5d   : > { %p1515_p11 = pneg %p1514_p10  ;;  %p1521_p1 = por %p1520_p12, %p1519_p7 }
  0x5f   : > { %p1522_p8 = pnand %p1521_p1, %p1515_p11 }
  0x61   : > { %1525 = shalt.err (!%p1522_p8)
}
  0x62   : > { %s2519_s12 = smov 128   ;;  %s2520_s7 = smov 384  }
  0x63   : > { %1285 = dma.hbm_to_vmem [thread:$0]  (!%p1966_p9), %s2032_s1, 384, %s2035_s2, %s2039_s21, %s2520_s7, %s2519_s12, %s1797_s4  }
  0x64   : > { %s1129_s30 = sadd.s32 4294967294, %s1792_s16   ;;  %s48_s5 = sadd.s32 1, %s1784_s14 }
  0x65   : > { %s2579_s5 = smov (!%p1930_p0, %s48_s5), %s1784_s14  ;;  %s117_s10 = sadd.s32 1, %s1752_s29 }
  0x66   : > { %p124_p13 = scmp.ne.s32.totalorder %s1752_s29, %s1748_s28  ;;  %p50_p7 = scmp.ge.s32.totalorder %s2579_s5, 2 }
  0x67   : > { %p130_p3 = scmp.ne.s32.totalorder %s1748_s28, %s1744_s27  ;;  %p2521_p5 = scmp.eq.s32.totalorder %s1792_s16, 0 }
  0x68   : > { %s225_s1 = sadd.s32 1, %s1740_s26  ;;  %s2581_s5 = smov (%p50_p7, %s2579_s5), 0 }
  0x69   : > { %p2080_p4 = por %p124_p13, %p2521_p5  ;;  %2523 = sst [smem:[#allocation29_spill]] %s2581_s5 }
  0x6a   : > { %s2524_s2 = sadd.s32 1, %s1788_s15  ;;  %s113_s19 = ssub.s32 %s1784_s14, %s2581_s5 }
  0x6b   : > { %s2583_s2 = smov (!%p50_p7, %s2524_s2), %s1788_s15  ;;  %p2525_p0 = scmp.eq.s32.totalorder %s1927_s17, 0 }
  0x6c   : > { %p54_p2 = scmp.ge.s32.totalorder %s2583_s2, 3  ;;  %s114_s27 = sor.u32 %s113_s19, %s1946_s22 }
  0x6d   : > { %p2094_p9 = por %p130_p3, %p2525_p0  ;;  %p115_p6 = scmp.eq.s32.totalorder %s114_s27, 0 }
  0x6e   : > { %p235_p10 = scmp.ne.s32.totalorder %s1740_s26, %s1736_s25  ;;  %s2585_s2 = smov (%p54_p2, %s2583_s2), 0 }
  0x6f   : > { %2527 = sst [smem:[#allocation30_spill]] %s2585_s2  ;;  %s56_s3 = ssub.s32 %s1788_s15, %s2585_s2 }
  0x70   : > { %s2104_s21 = scalar_select %p115_p6, %s1752_s29, %s117_s10  }
  0x71   : > { %p2529_p11 = scmp.eq.s32.totalorder %s1927_s17, 17  ;;  %s58_s11 = sor.u32 %s1946_s22, %s56_s3 }
  0x72   : > { %2528 = sst [smem:[#allocation31_spill]] %s2104_s21  ;;  %s222_s23 = sor.u32 %s113_s19, %s56_s3 }
  0x73   : > { %p2110_p12 = por %p2529_p11, %p235_p10  ;;  %p59_p1 = scmp.eq.s32.totalorder %s58_s11, 0 }
  0x74   : > { %p223_p8 = scmp.eq.s32.totalorder %s222_s23, 0  ;;  %p241_p13 = scmp.ne.s32.totalorder %s1736_s25, %s1732_s24 }
  0x75   : > { %s2530_s20 = scalar_select %p2110_p12, 1, 0 }
  0x76   : > { %p242_p7 = scmp.eq.s32.totalorder %s1129_s30, 17  ;;  %s2531_s7 = sadd.s32 1, %s1764_s9 }
  0x77   : > { %s2120_s27 = scalar_select %p59_p1, %s1764_s9, %s2531_s7  }
  0x78   : > { %s2123_s0 = scalar_select %p223_p8, %s1740_s26, %s225_s1  }
  0x79   : > { %2532 = sst [smem:[#allocation32_spill]] %s2120_s27  ;;  %p2125_p3 = por %p242_p7, %p241_p13 }
  0x7a   : > { %s2484_s2 = sand.u32 1, %s1752_s29   ;;  %s1170_s22 = sshll.u32 %s1780_s13, 5 }
  0x7b   : > { %s2533_s10 = scalar_select %p2125_p3, 1, 0 }
  0x7c   : > { %s2132_s5 = sshll.u32 %s2484_s2, 6  ;;  %s2136_s19 = sadd.s32 %s1784_s14, %s1170_s22 }
  0x7d   : > { %s2485_s30 = sshll.u32 %s2136_s19, 6  ;;  %s340_s3 = scalar_lea.vmem [#allocation7], %s2132_s5 }
  0x7e   : > { %s349_s11 = sshll.u32 %s340_s3, 4  ;;  %s2534_s7 = sld [smem:[#allocation35_spill]]  ;;  %s2147_s11 = int_to_ptr.vmem [resolvable:$true] %s349_s11 }
  0x7f   : > { %p2535_p5 = scmp.lt.s32.totalorder %s1792_s16, 18 }
  0x81   : > { %p2153_p0 = pnand %p2535_p5, %p2080_p4 }
  0x83   : > { %p1528_p6 = pneg %p2153_p0 }
  0x84   : > { %s2145_s15 = scalar_lea.hbm %s2534_s7, %s2485_s30  ;;  %s1531_s2 = scalar_lea.hbm %s2534_s7, 6144 }
  0x85   : > { %s1526_s3 = scalar_lea.hbm %s2145_s15, 1024  ;;  %p1532_p4 = scmp.lt.u32.totalorder %s2145_s15, %s2534_s7 }
  0x86   : > { %p1527_p2 = scmp.ne.s32.totalorder %s2145_s15, %s1526_s3  ;;  %p1533_p1 = scmp.lt.u32.totalorder %s1531_s2, %s1526_s3 }
  0x87   : > { %p1535_p13 = scmp.lt.u32.totalorder %s1526_s3, %s2145_s15 }
  0x88   : > { %p1529_p10 = pnand %p1528_p6, %p1527_p2  ;;  %p1534_p8 = por %p1533_p1, %p1532_p4 }
  0x8a   : > { %p1530_p11 = pneg %p1529_p10  ;;  %p1536_p7 = por %p1535_p13, %p1534_p8 }
  0x8c   : > { %p1537_p5 = pnand %p1536_p7, %p1530_p11 }
  0x8e   : > { %1540 = shalt.err (!%p1537_p5)
}
  0x8f   : > { %s1541_s14 = scalar_lea.vmem %s2147_s11, 1024  ;;  %s1799_s1 = smov [#allocation7]  }
  0x90   : > { %p1542_p2 = scmp.ne.s32.totalorder %s2147_s11, %s1541_s14  ;;  %s1546_s23 = sshll.u32 %s1799_s1, 4  ;;  %s1547_s23 = int_to_ptr.vmem [resolvable:$false] %s1546_s23 }
  0x91   : > { %s1548_s30 = scalar_lea.vmem %s1547_s23, 2048  ;;  %p1549_p12 = scmp.lt.s32.totalorder %s2147_s11, %s1547_s23 }
  0x92   : > { %p1544_p10 = pnand %p1542_p2, %p1528_p6  ;;  %p1550_p4 = scmp.lt.s32.totalorder %s1548_s30, %s1541_s14 }
  0x94   : > { %p1545_p3 = pneg %p1544_p10  ;;  %p1551_p1 = por %p1550_p4, %p1549_p12 }
  0x96   : > { %p1552_p8 = pnand %p1551_p1, %p1545_p3 }
  0x98   : > { %1555 = shalt.err (!%p1552_p8)
}
  0x99   : > { %s1800_s2 = smov 64   ;;  %s1801_s3 = smov 4  }
  0x9a   : > { %1291 = dma.hbm_to_vmem [thread:$0]  (!%p2153_p0), %s2145_s15, 1024, %s2147_s11, %s1988_s18, %s2519_s12, %s1800_s2, %s1801_s3  }
  0x9b   : > { %s2537_s8 = sshll.u32 %s2136_s19, 6  ;;  %s2538_s23 = sld [smem:[#allocation36_spill]] }
  0x9c   : > { %s363_s7 = scalar_lea.vmem [#allocation8], %s2132_s5  ;;  %s2539_s27 = sand.u32 1, %s1752_s29  }
  0x9d   : > { %s372_s13 = sshll.u32 %s363_s7, 4  ;;  %s2198_s9 = scalar_lea.sflag [#allocation9], %s2539_s27  ;;  %s2194_s13 = int_to_ptr.vmem [resolvable:$true] %s372_s13 }
  0xa1   : > { %s2191_s30 = scalar_lea.hbm %s2538_s23, %s2537_s8  ;;  %s1561_s19 = scalar_lea.hbm %s2538_s23, 6144 }
  0xa2   : > { %s1556_s21 = scalar_lea.hbm %s2191_s30, 1024  ;;  %p1562_p13 = scmp.lt.u32.totalorder %s2191_s30, %s2538_s23 }
  0xa3   : > { %p1557_p12 = scmp.ne.s32.totalorder %s2191_s30, %s1556_s21  ;;  %p1563_p7 = scmp.lt.u32.totalorder %s1561_s19, %s1556_s21 }
  0xa4   : > { %p1565_p2 = scmp.lt.u32.totalorder %s1556_s21, %s2191_s30 }
  0xa5   : > { %p1559_p3 = pnand %p1557_p12, %p1528_p6  ;;  %p1564_p5 = por %p1563_p7, %p1562_p13 }
  0xa7   : > { %p1560_p11 = pneg %p1559_p3  ;;  %p1566_p10 = por %p1565_p2, %p1564_p5 }
  0xa9   : > { %p1567_p4 = pnand %p1566_p10, %p1560_p11 }
  0xab   : > { %1570 = shalt.err (!%p1567_p4)
}
  0xac   : > { %s1571_s5 = scalar_lea.vmem %s2194_s13, 1024  ;;  %s1802_s27 = smov [#allocation8]  }
  0xad   : > { %p1572_p1 = scmp.ne.s32.totalorder %s2194_s13, %s1571_s5  ;;  %s1576_s7 = sshll.u32 %s1802_s27, 4  ;;  %s1577_s7 = int_to_ptr.vmem [resolvable:$false] %s1576_s7 }
  0xae   : > { %s1578_s14 = scalar_lea.vmem %s1577_s7, 2048  ;;  %p1579_p3 = scmp.lt.s32.totalorder %s2194_s13, %s1577_s7 }
  0xaf   : > { %p1574_p8 = pnand %p1572_p1, %p1528_p6  ;;  %p1580_p13 = scmp.lt.s32.totalorder %s1578_s14, %s1571_s5 }
  0xb1   : > { %p1575_p12 = pneg %p1574_p8  ;;  %p1581_p7 = por %p1580_p13, %p1579_p3 }
  0xb3   : > { %p1582_p5 = pnand %p1581_p7, %p1575_p12 }
  0xb5   : > { %1585 = shalt.err (!%p1582_p5)
}
  0xb6   : > { %1294 = dma.hbm_to_vmem [thread:$0]  (!%p2153_p0), %s2191_s30, 1024, %s2194_s13, %s2198_s9, %s2519_s12, %s1800_s2, %s1801_s3  }
  0xb7   : > { %p2540_p6 = scmp.ne.s32.totalorder %s2515_s6, 0 }
  0xb8   : > { %s2541_s21 = sld [smem:[#allocation19_spill]] (!%p2540_p6)  ;;  %s2542_s1 = sld [smem:[#allocation28_spill]] (!%p2540_p6) }
  0xb9   : > { %396 = sbr.rel (%p2540_p6) target bundleno = 519 (0x207), region = 44 }
  0xbe   : > { %s398_s15 = sand.u32 (!%p2540_p6), 1, %s2541_s21   ;;  %p2543_p11 = scmp.ne.s32.totalorder (!%p2540_p6), %s2542_s1, 0 }
  0xbf   : > { %s1268_s18 = smul.u32 (!%p2540_p6), 24, %s398_s15  ;;  %s399_s19 = scalar_lea.sflag (!%p2540_p6), [#allocation3], %s398_s15 }
  0xc1   : > { %s2230_s11 = scalar_lea.vmem [#allocation2], %s1268_s18 }
  0xc2   : > { %1707 = dma.done.wait (%p2543_p11), %s399_s19, 384  }
  0xc3   : > { %1709 = vsyncadd (%p2543_p11), %s399_s19, 4294966912  ;;  %s407_s22 = sand.u32 1, %s1927_s17   ;;  %s2237_s9 = scalar_lea.vmem [#allocation5], %s1268_s18 }
  0xc4   : > { %s408_s8 = scalar_lea.sflag [#allocation6], %s407_s22 }
  0xc5   : > { %1711 = dma.done.wait (%p2543_p11), %s408_s8, 384  }
  0xc6   : > { %1713 = vsyncadd (%p2543_p11), %s408_s8, 4294966912  ;;  %s418_s13 = sand.u32 1, %s1748_s28  }
  0xc7   : > { %s1143_s6 = sshll.u32 %s418_s13, 6 }
  0xc8   : > { %s2244_s12 = scalar_lea.vmem [#allocation7], %s1143_s6 }
  0xc9   : > { %1715 = dma.done.wait (%p2094_p9), %s408_s8, 1024  }
  0xca   : > { %1717 = vsyncadd (%p2094_p9), %s408_s8, 4294966272  ;;  %s426_s17 = scalar_lea.sflag [#allocation9], %s418_s13  ;;  %s2250_s2 = scalar_lea.vmem [#allocation8], %s1143_s6 }
  0xcb   : > { %1719 = dma.done.wait (%p2094_p9), %s426_s17, 1024  }
  0xcc   : > { %1721 = vsyncadd (%p2094_p9), %s426_s17, 4294966272  ;;  %s2544_s3 = sld [smem:[#allocation22_spill]]  ;;  %s2257_s30 = sand.u32 1, %s1736_s25  }
  0xcd   : > { %s1269_s5 = smul.u32 24, %s2257_s30  ;;  %s2545_s14 = sld [smem:[#allocation37_spill]] }
  0xce   : > { %s2546_s18 = sld [smem:[#allocation38_spill]]  ;;  %s2547_s8 = sld [smem:[#allocation21_spill]] }
  0xcf   : > { %s2268_s22 = scalar_lea.vmem [#allocation10], %s1269_s5  ;;  %s2270_s4 = scalar_lea.vmem [#allocation11], %s1269_s5 }
  0xd2   : > { %p490_p0 = scmp.lt.s32.totalorder %s2544_s3, 1 }
  0xd4   : > { %s2587_s3 = smov (!%p490_p0, %s2544_s3), 1  ;;  %p1145_p9 = scmp.ne.s32.totalorder %s2547_s8, 0 }
  0xd5   : > { %s492_s21 = scalar_lea.vmem %s2545_s14, %s2587_s3  ;;  %s495_s19 = scalar_lea.vmem %s2546_s18, %s2587_s3 }
  0xd6   : > { %502 = sbr.rel (%p1145_p9) target bundleno = 221 (0xdd), region = 64  ;;  %v1146_v0 = vld [vmem:[%s492_s21] ss:$0 sm:$0xff] (!%p1145_p9) }
  0xd7   : > { %v1147_v1 = vld [vmem:[%s495_s19] ss:$0 sm:$0xff] (!%p1145_p9)  ;;  %510 = vst [vmem:[%s2268_s22] sm:$0xff] (!%p1145_p9), %v1146_v0  ;;  %511 = vst [vmem:[%s2268_s22 + $0x8] sm:$0xff] (!%p1145_p9), %v1146_v0 }
  0xd8   : > { %512 = vst [vmem:[%s2268_s22 + $0x10] sm:$0xff] (!%p1145_p9), %v1146_v0  ;;  %520 = vst [vmem:[%s2270_s4] sm:$0xff] (!%p1145_p9), %v1147_v1 }
  0xd9   : > { %521 = vst [vmem:[%s2270_s4 + $0x8] sm:$0xff] (!%p1145_p9), %v1147_v1  ;;  %522 = vst [vmem:[%s2270_s4 + $0x10] sm:$0xff] (!%p1145_p9), %v1147_v1 }
  0xdd PF: > { %v529_v2 = vld [vmem:[%s2244_s12] sm:$0xff]   ;;  %v531_v3 = vld [vmem:[%s2244_s12 + $0x8] sm:$0xff]   ;;  %v533_v4 = vld [vmem:[%s2244_s12 + $0x10] sm:$0xff]   ;;  %s892_s17 = sshll.u32 %s2268_s22, 4  ;;  %s2550_s5 = sld [smem:[#allocation39_spill]]  ;;  %s2323_s17 = int_to_ptr.vmem [resolvable:$true] %s892_s17 }
  0xde   : > { %v561_v5 = vunpack.c.l.bf16 %v529_v2  ;;  %v562_v6 = vunpack.c.h.bf16 %v529_v2  ;;  %1204 = vmatprep.subr.bf16.mxu0 %v529_v2  ;;  %v535_v7 = vld [vmem:[%s2244_s12 + $0x18] sm:$0xff]   ;;  %v563_v8 = vunpack.c.l.bf16 %v531_v3  ;;  %v564_v10 = vunpack.c.h.bf16 %v531_v3  ;;  %v524_v13 = vld [vmem:[%s2230_s11 + $0x8] sm:$0xff]  ;;  %v526_v25 = vld [vmem:[%s2237_s9] sm:$0xff]  ;;  %s872_s7 = scalar_lea.sflag [#allocation4], %s2257_s30  ;;  %s1586_s14 = scalar_lea.vmem %s2323_s17, 384 }
  0xdf   : > { %1205 = vmatpush3.bf16.msra.mxu0 %v529_v2  ;;  %v2284_v9 = vld [vmem:[%s2230_s11] sm:$0xff]  ;;  %v565_v11 = vunpack.c.l.bf16 %v533_v4  ;;  %v566_v12 = vunpack.c.h.bf16 %v533_v4  ;;  %v567_v14 = vunpack.c.l.bf16 %v535_v7  ;;  %v568_v17 = vunpack.c.h.bf16 %v535_v7  ;;  %v527_v27 = vld [vmem:[%s2237_s9 + $0x8] sm:$0xff]  ;;  %v539_v33 = vld [vmem:[%s2244_s12 + $0x28] sm:$0xff]   ;;  %p1587_p2 = scmp.ne.s32.totalorder %s2323_s17, %s1586_s14  ;;  %p2551_p10 = scmp.ne.s32.totalorder %s2530_s20, 0 }
  0xe0   : > { %1206 = vmatprep.subr.bf16.mxu0 %v531_v3  ;;  %v577_v15 = vmul.f32 %v561_v5, %v561_v5  ;;  %v578_v16 = vmul.f32 %v562_v6, %v562_v6  ;;  %v612_v18 = vpack.c.bf16 %v524_v13, %v2284_v9  ;;  %v579_v19 = vmul.f32 %v563_v8, %v563_v8  ;;  %v537_v24 = vld [vmem:[%s2244_s12 + $0x20] sm:$0xff]   ;;  %v541_v40 = vld [vmem:[%s2244_s12 + $0x30] sm:$0xff]   ;;  %v543_v46 = vld [vmem:[%s2244_s12 + $0x38] sm:$0xff]   ;;  %s1803_s21 = smov [#allocation10]  }
  0xe1   : > { %v580_v21 = vmul.f32 %v564_v10, %v564_v10  ;;  %v581_v22 = vmul.f32 %v565_v11, %v565_v11  ;;  %v582_v23 = vmul.f32 %v566_v12, %v566_v12  ;;  %v569_v28 = vunpack.c.l.bf16 %v537_v24  ;;  %v525_v54 = vld [vmem:[%s2230_s11 + $0x10] sm:$0xff]  ;;  %v1450_v55 = vld [vmem:[%s2250_s2] sm:$0xff]   ;;  %s2548_s11 = sld [smem:[#allocation23_spill]]  ;;  %p1588_p4 = pnand %p1587_p2, %p2551_p10 }
  0xe2   : > { %v593_v20 = vpack.c.bf16 %v578_v16, %v577_v15  ;;  %1220 = vmatprep.mubr.bf16.mxu0 %v612_v18  ;;  %v570_v29 = vunpack.c.h.bf16 %v537_v24  ;;  %v583_v31 = vmul.f32 %v567_v14, %v567_v14  ;;  %v584_v32 = vmul.f32 %v568_v17, %v568_v17  ;;  %v1451_v62 = vld [vmem:[%s2250_s2 + $0x8] sm:$0xff]   ;;  %v528_v1 = vld [vmem:[%s2237_s9 + $0x10] sm:$0xff]  ;;  %v1452_v2 = vld [vmem:[%s2250_s2 + $0x10] sm:$0xff]   ;;  %s2549_s9 = sld [smem:[#allocation22_spill]]  ;;  %s1590_s1 = sshll.u32 %s1803_s21, 4  ;;  %s1591_s1 = int_to_ptr.vmem [resolvable:$false] %s1590_s1 }
  0xe3   : > { %1207 = vmatpush3.bf16.msra.mxu0 %v531_v3  ;;  %v594_v26 = vpack.c.bf16 %v580_v21, %v579_v19  ;;  %v595_v30 = vpack.c.bf16 %v582_v23, %v581_v22  ;;  %v719_v34 = vpack.c.bf16 %v527_v27, %v526_v25  ;;  %v571_v35 = vunpack.c.l.bf16 %v539_v33  ;;  %v1454_v5 = vld [vmem:[%s2250_s2 + $0x20] sm:$0xff]   ;;  %v1455_v6 = vld [vmem:[%s2250_s2 + $0x28] sm:$0xff]   ;;  %p1589_p1 = pneg %p1588_p4  ;;  %s1592_s15 = scalar_lea.vmem %s1591_s1, 768 }
  0xe4   : > { %1208 = vmatprep.subr.bf16.mxu0 %v533_v4  ;;  %1224 = vmatprep.subr.bf16.mxu1 %v593_v20  ;;  %v572_v36 = vunpack.c.h.bf16 %v539_v33  ;;  %v596_v37 = vpack.c.bf16 %v584_v32, %v583_v31  ;;  %v585_v38 = vmul.f32 %v569_v28, %v569_v28  ;;  %v586_v39 = vmul.f32 %v570_v29, %v570_v29  ;;  %v611_v12 = vld [vmem:[%s2268_s22 + $0x10] sm:$0xff]  ;;  %v610_v17 = vld [vmem:[%s2268_s22 + $0x8] sm:$0xff]  ;;  %p1593_p8 = scmp.lt.s32.totalorder %s2323_s17, %s1591_s1  ;;  %p1594_p12 = scmp.lt.s32.totalorder %s1592_s15, %s1586_s14 }
  0xe5   : > { %1225 = vmatpush3.bf16.msra.mxu1 %v593_v20  ;;  %1240 = vmatprep.mubr.bf16.mxu1 %v719_v34  ;;  %v573_v41 = vunpack.c.l.bf16 %v541_v40  ;;  %v574_v42 = vunpack.c.h.bf16 %v541_v40  ;;  %v587_v44 = vmul.f32 %v571_v35, %v571_v35  ;;  %v575_v47 = vunpack.c.l.bf16 %v543_v46 }
  0xe6   : > { %1226 = vmatprep.subr.bf16.mxu1 %v594_v26  ;;  %v597_v43 = vpack.c.bf16 %v586_v39, %v585_v38  ;;  %v588_v45 = vmul.f32 %v572_v36, %v572_v36  ;;  %v576_v48 = vunpack.c.h.bf16 %v543_v46  ;;  %v601_v52 = vmul.f32 %v2284_v9, %v2284_v9  ;;  %v1457_v9 = vld [vmem:[%s2250_s2 + $0x38] sm:$0xff]   ;;  %p1595_p3 = por %p1594_p12, %p1593_p8 }
  0xe7   : > { %1209 = vmatpush3.bf16.msra.mxu0 %v533_v4  ;;  %v589_v50 = vmul.f32 %v573_v41, %v573_v41  ;;  %v590_v51 = vmul.f32 %v574_v42, %v574_v42  ;;  %v602_v53 = vmul.f32 %v524_v13, %v524_v13  ;;  %v591_v57 = vmul.f32 %v575_v47, %v575_v47  ;;  %v1453_v4 = vld [vmem:[%s2250_s2 + $0x18] sm:$0xff]   ;;  %s1172_s13 = smul.u32 6, %s2548_s11 }
  0xe8   : > { %1210 = vmatprep.subr.bf16.mxu0 %v535_v7  ;;  %v598_v49 = vpack.c.bf16 %v588_v45, %v587_v44  ;;  %v592_v58 = vmul.f32 %v576_v48, %v576_v48  ;;  %v604_v59 = vadd.f32 %v601_v52, %v526_v25  ;;  %v613_v61 = vpack.c.bf16 %v525_v54, %v525_v54  ;;  %v609_v13 = vld [vmem:[%s2268_s22] sm:$0xff]  ;;  %p1596_p13 = pnand %p1595_p3, %p1589_p1 }
  0xe9   : > { %1227 = vmatpush3.bf16.msra.mxu1 %v594_v26  ;;  %v599_v56 = vpack.c.bf16 %v590_v51, %v589_v50  ;;  %v605_v60 = vadd.f32 %v602_v53, %v527_v27  ;;  %v720_v3 = vpack.c.bf16 %v528_v1, %v528_v1  ;;  %v603_v8 = vmul.f32 %v525_v54, %v525_v54  ;;  %s2308_s6 = sadd.s32 %s2549_s9, %s1172_s13 }
  0xea   : > { %1228 = vmatprep.subr.bf16.mxu1 %v595_v30  ;;  %v600_v63 = vpack.c.bf16 %v592_v58, %v591_v57  ;;  %s1165_s12 = sshll.u32 %s2308_s6, 7 }
  0xeb   : > { %1211 = vmatpush3.bf16.msra.mxu0 %v535_v7  ;;  %v607_v0 = vpack.c.bf16 %v605_v60, %v604_v59  ;;  %v1456_v7 = vld [vmem:[%s2250_s2 + $0x30] sm:$0xff]   ;;  %v606_v10 = vadd.f32 %v603_v8, %v528_v1  ;;  %s2320_s27 = scalar_lea.hbm %s2550_s5, %s1165_s12 }
  0xec   : > { %1212 = vmatprep.subr.bf16.mxu0 %v537_v24 }
  0xed   : > { %1229 = vmatpush3.bf16.msra.mxu1 %v595_v30  ;;  %v608_v11 = vpack.c.bf16 %v606_v10, %v606_v10 }
  0xee   : > { %1230 = vmatprep.subr.bf16.mxu1 %v596_v37 }
  0xef   : > { %1213 = vmatpush3.bf16.msra.mxu0 %v537_v24 }
  0xf0   : > { %1214 = vmatprep.subr.bf16.mxu0 %v539_v33 }
  0xf1   : > { %1231 = vmatpush3.bf16.msra.mxu1 %v596_v37 }
  0xf2   : > { %1232 = vmatprep.subr.bf16.mxu1 %v597_v43 }
  0xf3   : > { %1215 = vmatpush3.bf16.msra.mxu0 %v539_v33 }
  0xf4   : > { %1216 = vmatprep.subr.bf16.mxu0 %v541_v40 }
  0xf5   : > { %1233 = vmatpush3.bf16.msra.mxu1 %v597_v43 }
  0xf6   : > { %1234 = vmatprep.subr.bf16.mxu1 %v598_v49 }
  0xf7   : > { %1217 = vmatpush3.bf16.msra.mxu0 %v541_v40 }
  0xf8   : > { %1218 = vmatprep.subr.bf16.mxu0 %v543_v46 }
  0xf9   : > { %1235 = vmatpush3.bf16.msra.mxu1 %v598_v49 }
  0xfa   : > { %1236 = vmatprep.subr.bf16.mxu1 %v599_v56 }
  0xfb   : > { %1219 = vmatpush3.bf16.msra.mxu0 %v543_v46 }
  0xfc   : > { %1244 = vmatprep.subr.bf16.mxu0 %v1450_v55 }
  0xfd   : > { %1237 = vmatpush3.bf16.msra.mxu1 %v599_v56 }
  0xfe   : > { %1221 = vmatmul.mubr.bf16.vlgmr.msra.gmra.mrb[0].mxu0 %v613_v61  ;;  %1238 = vmatprep.subr.bf16.mxu1 %v600_v63 }
  0xff   : > { %1245 = vmatpush3.bf16.msra.mxu0 %v1450_v55  ;;  %1260 = vmatprep.mubr.bf16.mxu0 %v607_v0 }
 0x100   : > { %1246 = vmatprep.subr.bf16.mxu0 %v1451_v62 }
 0x101   : > { %1239 = vmatpush3.bf16.msra.mxu1 %v600_v63 }
 0x103   : > { %1247 = vmatpush3.bf16.msra.mxu0 %v1451_v62 }
 0x104   : > { %1248 = vmatprep.subr.bf16.mxu0 %v1452_v2  ;;  %1241 = vmatmul.mubr.bf16.vlgmr.msra.gmra.mrb[0].mxu1 %v720_v3 }
 0x107   : > { %1249 = vmatpush3.bf16.msra.mxu0 %v1452_v2 }
 0x108   : > { %1250 = vmatprep.subr.bf16.mxu0 %v1453_v4 }
 0x10b   : > { %1251 = vmatpush3.bf16.msra.mxu0 %v1453_v4 }
 0x10c   : > { %1252 = vmatprep.subr.bf16.mxu0 %v1454_v5 }
 0x10f   : > { %1253 = vmatpush3.bf16.msra.mxu0 %v1454_v5 }
 0x110   : > { %1254 = vmatprep.subr.bf16.mxu0 %v1455_v6 }
 0x113   : > { %1255 = vmatpush3.bf16.msra.mxu0 %v1455_v6 }
 0x114   : > { %1256 = vmatprep.subr.bf16.mxu0 %v1456_v7 }
 0x117   : > { %1257 = vmatpush3.bf16.msra.mxu0 %v1456_v7 }
 0x118   : > { %1258 = vmatprep.subr.bf16.mxu0 %v1457_v9 }
 0x11b   : > { %1259 = vmatpush3.bf16.msra.mxu0 %v1457_v9 }
 0x11e   : > { %1261 = vmatmul.mubr.bf16.vlgmr.msra.gmra.mrb[4].mxu0 %v608_v11 }
 0x1d1   : > { %v1222_v14 = vpop.f32.mrb[0].mxu0 }
 0x1d2   : > { %v712_v15 = vadd.f32 %v1222_v14, %v611_v12  ;;  %v696_v16 = vpop.f32.mrb[1].mxu0 }
 0x1d3   : > { %v710_v18 = vadd.f32 %v696_v16, %v609_v13  ;;  %v1223_v19 = vpop.f32.mrb[2].mxu0 }
 0x1d4   : > { %715 = vst [vmem:[%s2268_s22 + $0x10] sm:$0xff] %v712_v15  ;;  %v699_v20 = vpop.f32.mrb[3].mxu0 }
 0x1d5   : > { %713 = vst [vmem:[%s2268_s22] sm:$0xff] %v710_v18  ;;  %v711_v21 = vadd.f32 %v699_v20, %v610_v17 }
 0x1d7   : > { %714 = vst [vmem:[%s2268_s22 + $0x8] sm:$0xff] %v711_v21 }
 0x1d8   : > { %1599 = shalt.err (!%p1596_p13)
}
 0x1d9   : > { %s1600_s18 = scalar_lea.hbm %s2320_s27, 384  ;;  %s1604_s8 = scalar_lea.hbm %s2550_s5, 2304 }
 0x1da   : > { %p1601_p7 = scmp.ne.s32.totalorder %s2320_s27, %s1600_s18  ;;  %p1605_p11 = scmp.lt.u32.totalorder %s2320_s27, %s2550_s5 }
 0x1db   : > { %p1606_p0 = scmp.lt.u32.totalorder %s1604_s8, %s1600_s18  ;;  %p1608_p2 = scmp.lt.u32.totalorder %s1600_s18, %s2320_s27 }
 0x1dc   : > { %p1602_p5 = pnand %p1601_p7, %p2551_p10 }
 0x1dd   : > { %p1607_p9 = por %p1606_p0, %p1605_p11 }
 0x1de   : > { %p1603_p6 = pneg %p1602_p5 }
 0x1df   : > { %p1609_p4 = por %p1608_p2, %p1607_p9 }
 0x1e1   : > { %p1610_p1 = pnand %p1609_p4, %p1603_p6 }
 0x1e3   : > { %1613 = shalt.err (!%p1610_p1)
}
 0x1e4   : > { %s1804_s13 = smov 128   ;;  %s1805_s2 = smov 256   ;;  %v1242_v22 = vpop.f32.mrb[0].mxu1  ;;  %v718_v26 = vld [vmem:[%s2270_s4 + $0x10] sm:$0xff]  ;;  %v716_v29 = vld [vmem:[%s2270_s4] sm:$0xff]  ;;  %v717_v34 = vld [vmem:[%s2270_s4 + $0x8] sm:$0xff] }
 0x1e5   : > { %s1806_s3 = smov 8   ;;  %v755_v23 = vpop.f32.mrb[1].mxu1  ;;  %s2552_s14 = sld [smem:[#allocation40_spill]] }
 0x1e6   : > { %1278 = dma.vmem_to_hbm [thread:$0]  (%p2551_p10), %s2323_s17, 384, %s2320_s27, %s872_s7, %s1804_s13, %s1805_s2, %s1806_s3   ;;  %v1243_v24 = vpop.f32.mrb[2].mxu1 }
 0x1e7   : > { %v758_v25 = vpop.f32.mrb[3].mxu1  ;;  %s910_s17 = sshll.u32 %s2270_s4, 4  ;;  %s877_s15 = scalar_lea.sflag [#allocation12], %s2257_s30  ;;  %s2367_s17 = int_to_ptr.vmem [resolvable:$true] %s910_s17 }
 0x1e8   : > { %s1614_s18 = scalar_lea.vmem %s2367_s17, 384  ;;  %s1807_s19 = smov [#allocation11]  }
 0x1e9   : > { %p1615_p8 = scmp.ne.s32.totalorder %s2367_s17, %s1614_s18  ;;  %s1618_s22 = sshll.u32 %s1807_s19, 4  ;;  %s1619_s22 = int_to_ptr.vmem [resolvable:$false] %s1618_s22 }
 0x1ea   : > { %s1620_s6 = scalar_lea.vmem %s1619_s22, 768  ;;  %p1621_p13 = scmp.lt.s32.totalorder %s2367_s17, %s1619_s22 }
 0x1eb   : > { %s2553_s21 = smov %s2552_s14  ;;  %s2365_s1 = scalar_lea.hbm %s2552_s14, %s1165_s12 }
 0x1ec   : > { %p1616_p12 = pnand %p1615_p8, %p2551_p10  ;;  %p1622_p7 = scmp.lt.s32.totalorder %s1620_s6, %s1614_s18 }
 0x1ee   : > { %p1617_p3 = pneg %p1616_p12  ;;  %p1623_p5 = por %p1622_p7, %p1621_p13 }
 0x1f0   : > { %p1624_p6 = pnand %p1623_p5, %p1617_p3 }
 0x1f1   : > { %v1262_v27 = vpop.f32.mrb[4].mxu0 }
 0x1f2   : > { %v860_v28 = vadd.f32 %v1262_v27, %v1242_v22  ;;  %v851_v30 = vpop.f32.mrb[5].mxu0 }
 0x1f3   : > { %v852_v31 = vadd.f32 %v851_v30, %v755_v23  ;;  %v1263_v32 = vpop.f32.mrb[6].mxu0 }
 0x1f4   : > { %v867_v33 = vadd.f32 %v860_v28, %v718_v26  ;;  %v854_v35 = vpop.f32.mrb[7].mxu0 }
 0x1f5   : > { %v865_v36 = vadd.f32 %v852_v31, %v716_v29  ;;  %v855_v37 = vadd.f32 %v854_v35, %v758_v25 }
 0x1f6   : > { %870 = vst [vmem:[%s2270_s4 + $0x10] sm:$0xff] %v867_v33 }
 0x1f7   : > { %868 = vst [vmem:[%s2270_s4] sm:$0xff] %v865_v36  ;;  %v866_v38 = vadd.f32 %v855_v37, %v717_v34 }
 0x1f9   : > { %869 = vst [vmem:[%s2270_s4 + $0x8] sm:$0xff] %v866_v38 }
 0x1fa   : > { %1627 = shalt.err (!%p1624_p6)
}
 0x1fb   : > { %s1628_s4 = scalar_lea.hbm %s2365_s1, 384  ;;  %s1632_s11 = scalar_lea.hbm %s2553_s21, 2304 }
 0x1fc   : > { %p1629_p11 = scmp.ne.s32.totalorder %s2365_s1, %s1628_s4  ;;  %p1633_p2 = scmp.lt.u32.totalorder %s2365_s1, %s2553_s21 }
 0x1fd   : > { %p1634_p4 = scmp.lt.u32.totalorder %s1632_s11, %s1628_s4  ;;  %p1636_p8 = scmp.lt.u32.totalorder %s1628_s4, %s2365_s1 }
 0x1fe   : > { %p1630_p0 = pnand %p1629_p11, %p2551_p10 }
 0x1ff   : > { %p1635_p1 = por %p1634_p4, %p1633_p2 }
 0x200   : > { %p1631_p9 = pneg %p1630_p0 }
 0x201   : > { %p1637_p12 = por %p1636_p8, %p1635_p1 }
 0x203   : > { %p1638_p3 = pnand %p1637_p12, %p1631_p9 }
 0x205   : > { %1641 = shalt.err (!%p1638_p3)
}
 0x206   : > { %1279 = dma.vmem_to_hbm [thread:$0]  (%p2551_p10), %s2367_s17, 384, %s2365_s1, %s877_s15, %s1804_s13, %s1805_s2, %s1806_s3  }
 0x207 PF: > { %p1305_p13 = scmp.ge.s32.totalorder %s1792_s16, 2  ;;  %s925_s7 = sand.u32 1, %s1732_s24  }
 0x208   : > { %p2554_p7 = scmp.ne.s32.totalorder %s2533_s10, 0  ;;  %s926_s14 = scalar_lea.sflag [#allocation4], %s925_s7 }
 0x20a   : > { %p1296_p5 = pnand %p1305_p13, %p2554_p7 }
 0x20c   : > { %1723 = dma.done.wait (!%p1296_p5), %s926_s14, 384  }
 0x20d   : > { %1725 = vsyncadd (!%p1296_p5), %s926_s14, 4294966912  ;;  %s935_s20 = scalar_lea.sflag [#allocation12], %s925_s7 }
 0x20e   : > { %1727 = dma.done.wait (!%p1296_p5), %s935_s20, 384  }
 0x20f   : > { %1729 = vsyncadd (!%p1296_p5), %s935_s20, 4294966912  ;;  %s33_s16 = sadd.s32 1, %s1792_s16   ;;  %s2556_s13 = sld [smem:[#allocation31_spill]] }
 0x210   : > { %p2402_p6 = scmp.ge.s32.totalorder %s33_s16, 20   ;;  %s2557_s10 = sld [smem:[#allocation19_spill]] }
 0x211   : > { %s2558_s8 = sld [smem:[#allocation20_spill]]  ;;  %s2560_s2 = sld [smem:[#allocation24_spill]] }
 0x212   : > { %s2559_s9 = sld [smem:[#allocation32_spill]]  ;;  %s2561_s11 = sld [smem:[#allocation25_spill]] }
 0x213   : > { %s2562_s12 = sld [smem:[#allocation26_spill]]  ;;  %s2563_s3 = sld [smem:[#allocation27_spill]] }
 0x214   : > { %s2564_s14 = sld [smem:[#allocation29_spill]]  ;;  %s2565_s15 = sld [smem:[#allocation30_spill]] }
 0x215   : > { %s2566_s24 = smov %s1736_s25  ;;  %s2568_s25 = smov %s1740_s26 }
 0x216   : > { %s2569_s26 = smov %s2123_s0  ;;  %s2570_s27 = smov %s1748_s28 }
 0x217   : > { %s2571_s28 = smov %s1752_s29  ;;  %s2572_s29 = smov %s2556_s13 }
 0x218   : > { %s2573_s30 = smov %s2557_s10  ;;  %s2574_s10 = smov %s2560_s2 }
 0x219   : > { %s2575_s13 = smov %s2563_s3  ;;  %32 = sbr.rel (!%p2402_p6) target bundleno = 26 (0x1a), region = 153 }
 0x220   :  { %940 = vsyncpa [#allocation3], 1 }
 0x221   :  { %942 = vsyncpa [#allocation3 + $0x1], 1 }
 0x222   :  { %943 = vsyncpa [#allocation6], 1 }
 0x223   :  { %945 = vsyncpa [#allocation6 + $0x1], 1 }
 0x224   :  { %946 = vsyncpa [#allocation9], 1 }
 0x225   :  { %948 = vsyncpa [#allocation9 + $0x1], 1 }
 0x226   :  { %949 = vsyncpa [#allocation4], 1 }
 0x227   :  { %951 = vsyncpa [#allocation4 + $0x1], 1 }
 0x228   :  { %952 = vsyncpa [#allocation12], 1 }
 0x229   :  { %954 = vsyncpa [#allocation12 + $0x1], 1 }

</bundles_post_ra>
